<compile_context>
chip_gen: v6e
topology: v6e:2x2x1
jax: 0.10.0
libtpu: 0.0.40
codegen_flags: <defaults>
</compile_context>

<pallas_src>
import functools
import math

import jax
import jax.numpy as jnp
from jax.experimental import pallas as pl
from jax.experimental.pallas import tpu as pltpu


# Set True to feed the MXU bf16 operands (accumulation stays f32).  ~3x MXU
# throughput on v5e/v6e, at ~1e-3 relative error vs a pure-f32 reference.
_ALLOW_BF16_MATMUL = False


def _query_vmem_cap_bytes():
    """Chip-aware scoped-VMEM cap: leave ~25% headroom for compiler scratch."""
    try:
        phys = int(pltpu.get_tpu_info().vmem_capacity_bytes)
    except Exception:
        phys = 64 << 20  # conservative fallback (v7x per-TensorCore VMEM)
    return max(32 << 20, (phys * 3) // 4)


_VMEM_CAP = _query_vmem_cap_bytes()


# ----------------------------------------------------------------------------
# Tiling helpers
# ----------------------------------------------------------------------------
def _sublane_multiple(dtype):
    # f32 -> 8, bf16 -> 16, int8/fp8 -> 32 (sub-32-bit dtypes pack along sublanes)
    itemsize = jnp.dtype(dtype).itemsize
    return max(8, 32 // itemsize)


def _dot_dtype(dtype):
    if jnp.dtype(dtype).itemsize <= 2:
        return dtype  # already MXU-native
    return jnp.bfloat16 if _ALLOW_BF16_MATMUL else jnp.float32


def _pick_tile(dim, pref, align):
    """Largest multiple of `align` <= pref that evenly divides `dim`;
    otherwise fall back to the full dimension (always a legal block)."""
    if dim <= pref or dim % align != 0:
        return dim
    t = (min(pref, dim) // align) * align
    while t >= align:
        if dim % t == 0:
            return t
        t -= align
    return dim


def _maybe_split_for_megacore(M, N, tm, tn, sub):
    """If the parallel grid collapses to one block on non-trivial work, split
    a tile so v7x's second TensorCore has something to do."""
    if (M // tm) * (N // tn) > 1 or M * N < (1 << 15):
        return tm, tn
    if tn % 256 == 0:
        return tm, tn // 2
    if tm % (2 * sub) == 0:
        return tm // 2, tn
    return tm, tn


def _clamp_vmem(est):
    return int(min(max(est * 5 // 4, 32 << 20), _VMEM_CAP))


# ----------------------------------------------------------------------------
# Kernels
# ----------------------------------------------------------------------------
def _linear_kernel(x_ref, w_ref, b_ref, o_ref, acc_ref, *, square, dot_dtype):
    """One (tm, tn) tile of out = x @ w + b (optionally squared), K tiled."""
    k = pl.program_id(2)

    @pl.when(k == 0)
    def _():
        # Fold the bias into the accumulator init (no epilogue VPU pass).
        acc_ref[...] = jnp.broadcast_to(
            b_ref[...].astype(jnp.float32), acc_ref.shape)

    acc_ref[...] += jnp.dot(
        x_ref[...].astype(dot_dtype), w_ref[...].astype(dot_dtype),
        preferred_element_type=jnp.float32)

    @pl.when(k == pl.num_programs(2) - 1)
    def _():
        r = acc_ref[...]
        if square:  # compile-time flag
            r = r * r
        o_ref[...] = r.astype(o_ref.dtype)


def _quad_layer_kernel(x_ref, wq_ref, bq_ref, wl_ref, bl_ref, o_ref, acc_ref,
                       *, dot_dtype):
    """One (tm, tn) tile of out = ((x @ wq + bq) ** 2) @ wl + bl, with the
    expanded dim E tiled as the reduction axis (te slice stays in VMEM)."""
    e = pl.program_id(2)

    @pl.when(e == 0)
    def _():
        acc_ref[...] = jnp.broadcast_to(
            bl_ref[...].astype(jnp.float32), acc_ref.shape)

    t = jnp.dot(x_ref[...].astype(dot_dtype), wq_ref[...].astype(dot_dtype),
                preferred_element_type=jnp.float32)
    t = t + bq_ref[...].astype(jnp.float32)
    t = t * t                                   # fused quadratic activation
    acc_ref[...] += jnp.dot(t.astype(dot_dtype), wl_ref[...].astype(dot_dtype),
                            preferred_element_type=jnp.float32)

    @pl.when(e == pl.num_programs(2) - 1)
    def _():
        o_ref[...] = acc_ref[...].astype(o_ref.dtype)


def _fused_net_kernel(*refs, num_hidden, dot_dtype):
    """Whole network in one kernel (small-batch regime, weights VMEM-resident).
    refs = (x, [wq, bq, wl, bl] * num_hidden, w_fused, b_fused, out)."""
    x_ref, o_ref = refs[0], refs[-1]
    w = refs[1:-1]
    h = x_ref[...]
    for l in range(num_hidden):
        wq, bq, wl, bl = w[4 * l: 4 * l + 4]
        t = jnp.dot(h.astype(dot_dtype), wq[...].astype(dot_dtype),
                    preferred_element_type=jnp.float32)
        t = t + bq[...].astype(jnp.float32)
        t = t * t
        h = jnp.dot(t.astype(dot_dtype), wl[...].astype(dot_dtype),
                    preferred_element_type=jnp.float32)
        h = h + bl[...].astype(jnp.float32)
    wf, bf = w[4 * num_hidden], w[4 * num_hidden + 1]
    y = jnp.dot(h.astype(dot_dtype), wf[...].astype(dot_dtype),
                preferred_element_type=jnp.float32)
    y = y + bf[...].astype(jnp.float32)
    o_ref[...] = y.astype(o_ref.dtype)


# ----------------------------------------------------------------------------
# pallas_call wrappers
# ----------------------------------------------------------------------------
def pallas_linear(x, w, b2d, *, square=False, tm_pref=256, tn_pref=512, tk_pref=512):
    M, K = x.shape
    Kw, N = w.shape
    assert K == Kw and b2d.shape == (1, N)

    sub = _sublane_multiple(x.dtype)
    tm = _pick_tile(M, tm_pref, sub)
    tk = _pick_tile(K, tk_pref, 128)
    tn = _pick_tile(N, tn_pref, 128)
    tm, tn = _maybe_split_for_megacore(M, N, tm, tn, sub)

    grid = (M // tm, N // tn, K // tk)
    itemsize = jnp.dtype(x.dtype).itemsize
    est = 2 * (tm * tk + tk * tn + tn + tm * tn) * itemsize + tm * tn * 4

    return pl.pallas_call(
        functools.partial(_linear_kernel, square=square,
                          dot_dtype=_dot_dtype(x.dtype)),
        out_shape=jax.ShapeDtypeStruct((M, N), x.dtype),
        grid_spec=pltpu.PrefetchScalarGridSpec(
            num_scalar_prefetch=0,
            grid=grid,
            in_specs=[
                pl.BlockSpec((tm, tk), lambda i, j, k: (i, k)),
                pl.BlockSpec((tk, tn), lambda i, j, k: (k, j)),
                pl.BlockSpec((1, tn), lambda i, j, k: (0, j)),
            ],
            out_specs=pl.BlockSpec((tm, tn), lambda i, j, k: (i, j)),
            scratch_shapes=[pltpu.VMEM((tm, tn), jnp.float32)],
        ),
        compiler_params=pltpu.CompilerParams(
            dimension_semantics=("parallel", "parallel", "arbitrary"),
            vmem_limit_bytes=_clamp_vmem(est),
        ),
    )(x, w, b2d)


def pallas_quadratic_layer(x, wq, bq2d, wl, bl2d, *,
                           tm_pref=256, tn_pref=512, te_pref=512):
    """out = ((x @ wq + bq) ** 2) @ wl + bl with the (M, E) expanded
    intermediate kept entirely in VMEM (no HBM round trip)."""
    M, K = x.shape
    Kq, E = wq.shape
    El, N = wl.shape
    assert K == Kq and E == El
    assert bq2d.shape == (1, E) and bl2d.shape == (1, N)

    sub = _sublane_multiple(x.dtype)
    tm = _pick_tile(M, tm_pref, sub)
    te = _pick_tile(E, te_pref, 128)
    tn = _pick_tile(N, tn_pref, 128)
    tm, tn = _maybe_split_for_megacore(M, N, tm, tn, sub)

    grid = (M // tm, N // tn, E // te)
    itemsize = jnp.dtype(x.dtype).itemsize
    est = (2 * (tm * K + K * te + te + te * tn + tn + tm * tn) * itemsize
           + tm * tn * 4        # f32 accumulator scratch
           + tm * te * 4)       # squared intermediate (f32, compiler temp)

    return pl.pallas_call(
        functools.partial(_quad_layer_kernel, dot_dtype=_dot_dtype(x.dtype)),
        out_shape=jax.ShapeDtypeStruct((M, N), x.dtype),
        grid_spec=pltpu.PrefetchScalarGridSpec(
            num_scalar_prefetch=0,
            grid=grid,
            in_specs=[
                pl.BlockSpec((tm, K), lambda i, j, e: (i, 0)),
                pl.BlockSpec((K, te), lambda i, j, e: (0, e)),
                pl.BlockSpec((1, te), lambda i, j, e: (0, e)),
                pl.BlockSpec((te, tn), lambda i, j, e: (e, j)),
                pl.BlockSpec((1, tn), lambda i, j, e: (0, j)),
            ],
            out_specs=pl.BlockSpec((tm, tn), lambda i, j, e: (i, j)),
            scratch_shapes=[pltpu.VMEM((tm, tn), jnp.float32)],
        ),
        compiler_params=pltpu.CompilerParams(
            dimension_semantics=("parallel", "parallel", "arbitrary"),
            vmem_limit_bytes=_clamp_vmem(est),
        ),
    )(x, wq, bq2d, wl, bl2d)


def _whole_net_budget(x, prep):
    """(tm, est_bytes) for the whole-network single-kernel path."""
    M, D_in = x.shape
    itemsize = jnp.dtype(x.dtype).itemsize
    sub = _sublane_multiple(x.dtype)
    tm = _pick_tile(M, 128, sub)
    wbytes, max_e = 0, 1
    for (wq, bq, wl, bl) in prep["hidden"]:
        wbytes += (wq.size + bq.size + wl.size + bl.size) * itemsize
        max_e = max(max_e, wq.shape[1])
    wf, bf = prep["w_fused"], prep["b_fused"]
    wbytes += (wf.size + bf.size) * itemsize
    io = (tm * D_in + tm * bf.shape[-1]) * itemsize
    inter = 2 * tm * max_e * 4
    est = 2 * (wbytes + io) + inter
    return tm, est


def pallas_fused_forward(x, prep):
    """Whole-network single pallas_call: every weight is DMA'd from HBM exactly
    once, no activation HBM traffic, one kernel launch total."""
    M, D_in = x.shape
    tm, est = _whole_net_budget(x, prep)
    D_out = prep["b_fused"].shape[-1]

    weights = []
    for (wq, bq, wl, bl) in prep["hidden"]:
        weights += [wq, bq, wl, bl]
    weights += [prep["w_fused"], prep["b_fused"]]

    in_specs = [pl.BlockSpec((tm, D_in), lambda i: (i, 0))]
    for wgt in weights:
        in_specs.append(pl.BlockSpec(wgt.shape, lambda i: (0, 0)))

    return pl.pallas_call(
        functools.partial(_fused_net_kernel,
                          num_hidden=len(prep["hidden"]),
                          dot_dtype=_dot_dtype(x.dtype)),
        out_shape=jax.ShapeDtypeStruct((M, D_out), x.dtype),
        grid_spec=pltpu.PrefetchScalarGridSpec(
            num_scalar_prefetch=0,
            grid=(M // tm,),
            in_specs=in_specs,
            out_specs=pl.BlockSpec((tm, D_out), lambda i: (i, 0)),
        ),
        compiler_params=pltpu.CompilerParams(
            dimension_semantics=("parallel",),
            vmem_limit_bytes=_clamp_vmem(est),
        ),
    )(x, *weights)


# ----------------------------------------------------------------------------
# Parameter prep + full forward (matches the PyTorch module's forward exactly)
# ----------------------------------------------------------------------------
def prepare_params(params):
    """One-time prep: reshape biases to (1, n), zero-pad large unaligned
    expanded dims (exact), and collapse the two trailing linears
    (y = (x@Wq_out+bq_out)@W_out+b_out == x@(Wq_out@W_out)+(bq_out@W_out+b_out))."""
    hi = jax.lax.Precision.HIGHEST
    hidden = []
    for (wq, bq, wl, bl) in params["hidden"]:
        E = wq.shape[1]
        if E > 512 and E % 128 != 0:
            pad = (-E) % 128
            wq = jnp.pad(wq, ((0, 0), (0, pad)))
            bq = jnp.pad(bq, ((0, pad),))
            wl = jnp.pad(wl, ((0, pad), (0, 0)))
        hidden.append((wq, bq.reshape(1, -1), wl, bl.reshape(1, -1)))
    dtype = params["w_out"].dtype
    wq_o = params["wq_out"].astype(jnp.float32)
    w_o = params["w_out"].astype(jnp.float32)
    w_fused = jnp.dot(wq_o, w_o, precision=hi)
    b_fused = jnp.dot(params["bq_out"].astype(jnp.float32), w_o,
                      precision=hi) + params["b_out"].astype(jnp.float32)
    return {
        "hidden": hidden,
        "w_fused": w_fused.astype(dtype),
        "b_fused": b_fused.reshape(1, -1).astype(dtype),
    }


def quadratic_test_forward(x, prep):
    _, est = _whole_net_budget(x, prep)
    if x.shape[0] <= 256 and est <= int(_VMEM_CAP * 0.7):
        # Small-batch regime: whole network in one kernel.
        return pallas_fused_forward(x, prep)
    # General regime: one fused kernel per hidden layer + collapsed output linear.
    for (wq, bq, wl, bl) in prep["hidden"]:
        x = pallas_quadratic_layer(x, wq, bq, wl, bl)
    return pallas_linear(x, prep["w_fused"], prep["b_fused"], square=False)


quadratic_test_forward_jit = jax.jit(quadratic_test_forward)


# ----------------------------------------------------------------------------
# Parameter init (PyTorch nn.Linear style: U(-1/sqrt(fan_in), 1/sqrt(fan_in)))
# ----------------------------------------------------------------------------
def _init_linear(key, fan_in, fan_out, dtype):
    kw, kb = jax.random.split(key)
    bound = 1.0 / math.sqrt(fan_in)
    w = jax.random.uniform(kw, (fan_in, fan_out), dtype, -bound, bound)
    b = jax.random.uniform(kb, (fan_out,), dtype, -bound, bound)
    return w, b


def init_params(key, D_in, H, D_out, layers, dtype=jnp.float32):
    params = {"hidden": []}
    for l in range(layers):
        key, k1, k2 = jax.random.split(key, 3)
        if l == 0:
            wq, bq = _init_linear(k1, D_in, H * D_in, dtype)
            wl, bl = _init_linear(k2, H * D_in, H, dtype)
        else:
            wq, bq = _init_linear(k1, H, H * H, dtype)
            wl, bl = _init_linear(k2, H * H, H, dtype)
        params["hidden"].append((wq, bq, wl, bl))
    key, k1, k2 = jax.random.split(key, 3)
    params["wq_out"], params["bq_out"] = _init_linear(k1, H, D_out * H, dtype)
    params["w_out"], params["b_out"] = _init_linear(k2, H * D_out, D_out, dtype)
    return params


def forward_reference(x, params):
    hi = jax.lax.Precision.HIGHEST
    for wq, bq, wl, bl in params["hidden"]:
        x = (jnp.dot(x, wq, precision=hi) + bq) ** 2
        x = jnp.dot(x, wl, precision=hi) + bl
    x = jnp.dot(x, params["wq_out"], precision=hi) + params["bq_out"]
    return jnp.dot(x, params["w_out"], precision=hi) + params["b_out"]


if __name__ == "__main__":
    key = jax.random.PRNGKey(0)
    dtype = jnp.float32

    # --- Test 1: module-consistent small shapes (batch=2, D_in=16, H=8, D_out=4,
    #     2 layers) -> small-batch regime, whole-network single-kernel path.
    D_in, H, D_out, layers = 16, 8, 4, 2
    batch = 2
    key, kx, kp = jax.random.split(key, 3)
    x = jax.random.normal(kx, (batch, D_in), dtype=dtype)
    params = init_params(kp, D_in, H, D_out, layers, dtype)
    prep = prepare_params(params)

    y = quadratic_test_forward_jit(x, prep)
    jax.block_until_ready(y)
    ref = forward_reference(x, params)
    assert y.shape == ref.shape == (batch, D_out), (y.shape, ref.shape)
    assert y.dtype == ref.dtype
    assert jnp.allclose(y, ref, atol=1e-4, rtol=1e-4), float(jnp.max(jnp.abs(y - ref)))

    # --- Test 2: larger batch -> per-layer fused kernels + collapsed output linear.
    D_in2, H2, D_out2, layers2 = 128, 16, 8, 2
    batch2 = 512
    key, kx2, kp2 = jax.random.split(key, 3)
    x2 = jax.random.normal(kx2, (batch2, D_in2), dtype=dtype)
    params2 = init_params(kp2, D_in2, H2, D_out2, layers2, dtype)
    prep2 = prepare_params(params2)

    y2 = quadratic_test_forward_jit(x2, prep2)
    jax.block_until_ready(y2)
    ref2 = forward_reference(x2, params2)
    assert y2.shape == ref2.shape == (batch2, D_out2), (y2.shape, ref2.shape)
    assert jnp.allclose(y2, ref2, atol=2e-4, rtol=2e-4), float(jnp.max(jnp.abs(y2 - ref2)))

    print("KERNEL_OK")
</pallas_src>

<mosaic_0001>
module attributes {stable_mosaic.version = 11 : i64} {
  func.func @_fused_net_kernel(%arg0: i32, %arg1: memref<2x16xf32, #tpu.memory_space<vmem>>, %arg2: memref<16x128xf32, #tpu.memory_space<vmem>>, %arg3: memref<1x128xf32, #tpu.memory_space<vmem>>, %arg4: memref<128x8xf32, #tpu.memory_space<vmem>>, %arg5: memref<1x8xf32, #tpu.memory_space<vmem>>, %arg6: memref<8x64xf32, #tpu.memory_space<vmem>>, %arg7: memref<1x64xf32, #tpu.memory_space<vmem>>, %arg8: memref<64x8xf32, #tpu.memory_space<vmem>>, %arg9: memref<1x8xf32, #tpu.memory_space<vmem>>, %arg10: memref<8x4xf32, #tpu.memory_space<vmem>>, %arg11: memref<1x4xf32, #tpu.memory_space<vmem>>, %arg12: memref<2x4xf32, #tpu.memory_space<vmem>>) attributes {dimension_semantics = [#tpu.dimension_semantics<parallel>], iteration_bounds = array<i64: 1>, scalar_prefetch = 0 : i64, scratch_operands = 0 : i64, tpu.core_type = #tpu.core_type<tc>, window_params = [{transform_indices = @transform_0, window_bounds = array<i64: 2, 16>}, {pipeline_mode = #tpu.pipeline_mode<synchronous>, transform_indices = @transform_1, window_bounds = array<i64: 16, 128>}, {pipeline_mode = #tpu.pipeline_mode<synchronous>, transform_indices = @transform_2, window_bounds = array<i64: 1, 128>}, {pipeline_mode = #tpu.pipeline_mode<synchronous>, transform_indices = @transform_3, window_bounds = array<i64: 128, 8>}, {pipeline_mode = #tpu.pipeline_mode<synchronous>, transform_indices = @transform_4, window_bounds = array<i64: 1, 8>}, {pipeline_mode = #tpu.pipeline_mode<synchronous>, transform_indices = @transform_5, window_bounds = array<i64: 8, 64>}, {pipeline_mode = #tpu.pipeline_mode<synchronous>, transform_indices = @transform_6, window_bounds = array<i64: 1, 64>}, {pipeline_mode = #tpu.pipeline_mode<synchronous>, transform_indices = @transform_7, window_bounds = array<i64: 64, 8>}, {pipeline_mode = #tpu.pipeline_mode<synchronous>, transform_indices = @transform_8, window_bounds = array<i64: 1, 8>}, {pipeline_mode = #tpu.pipeline_mode<synchronous>, transform_indices = @transform_9, window_bounds = array<i64: 8, 4>}, {pipeline_mode = #tpu.pipeline_mode<synchronous>, transform_indices = @transform_10, window_bounds = array<i64: 1, 4>}, {transform_indices = @transform_11, window_bounds = array<i64: 2, 4>}]} {
    %c0 = arith.constant 0 : index
    %c0_0 = arith.constant 0 : index
    %0 = vector.load %arg1[%c0, %c0_0] : memref<2x16xf32, #tpu.memory_space<vmem>>, vector<2x16xf32>
    %c0_1 = arith.constant 0 : index
    %c0_2 = arith.constant 0 : index
    %1 = vector.load %arg2[%c0_1, %c0_2] : memref<16x128xf32, #tpu.memory_space<vmem>>, vector<16x128xf32>
    %cst = arith.constant dense<0.000000e+00> : vector<2x128xf32>
    %2 = tpu.matmul %0, %1, %cst {dimension_numbers = #tpu.dot_dimension_numbers<[1], [0], [0], [1], [0, 0, 1, 1], [], []>} : vector<2x16xf32>, vector<16x128xf32>, vector<2x128xf32> -> vector<2x128xf32>
    %c0_3 = arith.constant 0 : index
    %c0_4 = arith.constant 0 : index
    %3 = vector.load %arg3[%c0_3, %c0_4] : memref<1x128xf32, #tpu.memory_space<vmem>>, vector<1x128xf32>
    %4 = vector.broadcast %3 : vector<1x128xf32> to vector<2x128xf32>
    %5 = arith.addf %2, %4 : vector<2x128xf32>
    %6 = arith.mulf %5, %5 : vector<2x128xf32>
    %c0_5 = arith.constant 0 : index
    %c0_6 = arith.constant 0 : index
    %7 = vector.load %arg4[%c0_5, %c0_6] : memref<128x8xf32, #tpu.memory_space<vmem>>, vector<128x8xf32>
    %cst_7 = arith.constant dense<0.000000e+00> : vector<2x8xf32>
    %8 = tpu.matmul %6, %7, %cst_7 {dimension_numbers = #tpu.dot_dimension_numbers<[1], [0], [0], [1], [0, 0, 1, 1], [], []>} : vector<2x128xf32>, vector<128x8xf32>, vector<2x8xf32> -> vector<2x8xf32>
    %c0_8 = arith.constant 0 : index
    %c0_9 = arith.constant 0 : index
    %9 = vector.load %arg5[%c0_8, %c0_9] : memref<1x8xf32, #tpu.memory_space<vmem>>, vector<1x8xf32>
    %10 = vector.broadcast %9 : vector<1x8xf32> to vector<2x8xf32>
    %11 = arith.addf %8, %10 : vector<2x8xf32>
    %c0_10 = arith.constant 0 : index
    %c0_11 = arith.constant 0 : index
    %12 = vector.load %arg6[%c0_10, %c0_11] : memref<8x64xf32, #tpu.memory_space<vmem>>, vector<8x64xf32>
    %cst_12 = arith.constant dense<0.000000e+00> : vector<2x64xf32>
    %13 = tpu.matmul %11, %12, %cst_12 {dimension_numbers = #tpu.dot_dimension_numbers<[1], [0], [0], [1], [0, 0, 1, 1], [], []>} : vector<2x8xf32>, vector<8x64xf32>, vector<2x64xf32> -> vector<2x64xf32>
    %c0_13 = arith.constant 0 : index
    %c0_14 = arith.constant 0 : index
    %14 = vector.load %arg7[%c0_13, %c0_14] : memref<1x64xf32, #tpu.memory_space<vmem>>, vector<1x64xf32>
    %15 = vector.broadcast %14 : vector<1x64xf32> to vector<2x64xf32>
    %16 = arith.addf %13, %15 : vector<2x64xf32>
    %17 = arith.mulf %16, %16 : vector<2x64xf32>
    %c0_15 = arith.constant 0 : index
    %c0_16 = arith.constant 0 : index
    %18 = vector.load %arg8[%c0_15, %c0_16] : memref<64x8xf32, #tpu.memory_space<vmem>>, vector<64x8xf32>
    %cst_17 = arith.constant dense<0.000000e+00> : vector<2x8xf32>
    %19 = tpu.matmul %17, %18, %cst_17 {dimension_numbers = #tpu.dot_dimension_numbers<[1], [0], [0], [1], [0, 0, 1, 1], [], []>} : vector<2x64xf32>, vector<64x8xf32>, vector<2x8xf32> -> vector<2x8xf32>
    %c0_18 = arith.constant 0 : index
    %c0_19 = arith.constant 0 : index
    %20 = vector.load %arg9[%c0_18, %c0_19] : memref<1x8xf32, #tpu.memory_space<vmem>>, vector<1x8xf32>
    %21 = vector.broadcast %20 : vector<1x8xf32> to vector<2x8xf32>
    %22 = arith.addf %19, %21 : vector<2x8xf32>
    %c0_20 = arith.constant 0 : index
    %c0_21 = arith.constant 0 : index
    %23 = vector.load %arg10[%c0_20, %c0_21] : memref<8x4xf32, #tpu.memory_space<vmem>>, vector<8x4xf32>
    %cst_22 = arith.constant dense<0.000000e+00> : vector<2x4xf32>
    %24 = tpu.matmul %22, %23, %cst_22 {dimension_numbers = #tpu.dot_dimension_numbers<[1], [0], [0], [1], [0, 0, 1, 1], [], []>} : vector<2x8xf32>, vector<8x4xf32>, vector<2x4xf32> -> vector<2x4xf32>
    %c0_23 = arith.constant 0 : index
    %c0_24 = arith.constant 0 : index
    %25 = vector.load %arg11[%c0_23, %c0_24] : memref<1x4xf32, #tpu.memory_space<vmem>>, vector<1x4xf32>
    %26 = vector.broadcast %25 : vector<1x4xf32> to vector<2x4xf32>
    %27 = arith.addf %24, %26 : vector<2x4xf32>
    %c0_25 = arith.constant 0 : index
    %c0_26 = arith.constant 0 : index
    %28 = vector.load %arg12[%c0_25, %c0_26] : memref<2x4xf32, #tpu.memory_space<vmem>>, vector<2x4xf32>
    tpu.vector_store %arg12[%c0_25, %c0_26], %27 {strides = array<i32>} : memref<2x4xf32, #tpu.memory_space<vmem>>, vector<2x4xf32>,
    return
  }
  func.func @transform_0(%arg0: i32) -> (i32, i32) {
    %c0_i32 = arith.constant 0 : i32
    %c0_i32_0 = arith.constant 0 : i32
    return %arg0, %c0_i32 : i32, i32
  }
  func.func @transform_1(%arg0: i32) -> (i32, i32) {
    %c0_i32 = arith.constant 0 : i32
    %c0_i32_0 = arith.constant 0 : i32
    %c0_i32_1 = arith.constant 0 : i32
    return %c0_i32, %c0_i32_0 : i32, i32
  }
  func.func @transform_2(%arg0: i32) -> (i32, i32) {
    %c0_i32 = arith.constant 0 : i32
    %c0_i32_0 = arith.constant 0 : i32
    %c0_i32_1 = arith.constant 0 : i32
    return %c0_i32, %c0_i32_0 : i32, i32
  }
  func.func @transform_3(%arg0: i32) -> (i32, i32) {
    %c0_i32 = arith.constant 0 : i32
    %c0_i32_0 = arith.constant 0 : i32
    %c0_i32_1 = arith.constant 0 : i32
    return %c0_i32, %c0_i32_0 : i32, i32
  }
  func.func @transform_4(%arg0: i32) -> (i32, i32) {
    %c0_i32 = arith.constant 0 : i32
    %c0_i32_0 = arith.constant 0 : i32
    %c0_i32_1 = arith.constant 0 : i32
    return %c0_i32, %c0_i32_0 : i32, i32
  }
  func.func @transform_5(%arg0: i32) -> (i32, i32) {
    %c0_i32 = arith.constant 0 : i32
    %c0_i32_0 = arith.constant 0 : i32
    %c0_i32_1 = arith.constant 0 : i32
    return %c0_i32, %c0_i32_0 : i32, i32
  }
  func.func @transform_6(%arg0: i32) -> (i32, i32) {
    %c0_i32 = arith.constant 0 : i32
    %c0_i32_0 = arith.constant 0 : i32
    %c0_i32_1 = arith.constant 0 : i32
    return %c0_i32, %c0_i32_0 : i32, i32
  }
  func.func @transform_7(%arg0: i32) -> (i32, i32) {
    %c0_i32 = arith.constant 0 : i32
    %c0_i32_0 = arith.constant 0 : i32
    %c0_i32_1 = arith.constant 0 : i32
    return %c0_i32, %c0_i32_0 : i32, i32
  }
  func.func @transform_8(%arg0: i32) -> (i32, i32) {
    %c0_i32 = arith.constant 0 : i32
    %c0_i32_0 = arith.constant 0 : i32
    %c0_i32_1 = arith.constant 0 : i32
    return %c0_i32, %c0_i32_0 : i32, i32
  }
  func.func @transform_9(%arg0: i32) -> (i32, i32) {
    %c0_i32 = arith.constant 0 : i32
    %c0_i32_0 = arith.constant 0 : i32
    %c0_i32_1 = arith.constant 0 : i32
    return %c0_i32, %c0_i32_0 : i32, i32
  }
  func.func @transform_10(%arg0: i32) -> (i32, i32) {
    %c0_i32 = arith.constant 0 : i32
    %c0_i32_0 = arith.constant 0 : i32
    %c0_i32_1 = arith.constant 0 : i32
    return %c0_i32, %c0_i32_0 : i32, i32
  }
  func.func @transform_11(%arg0: i32) -> (i32, i32) {
    %c0_i32 = arith.constant 0 : i32
    %c0_i32_0 = arith.constant 0 : i32
    return %arg0, %c0_i32 : i32, i32
  }
}

</mosaic_0001>

<bundles_post_ra>
// kernel: quadratic_test_forward.1
= control target key start
LH: loop header
LB: loop body
LE: loop exit
PB: predicated region body
PF: predicated region fallthrough
CT: control target
= control target key end

     0   :  { %v624_v1 = vmov 0.0   ;;  %vm625_vm0 = vmmov 0   ;;  %vm49_vm1 = vcmask 130048   ;;  %s832_s0 = inlined_call_operand.vmem [shape: f32[2,16], index: 0, kind: input, shape index: {}]   ;;  %s833_s1 = inlined_call_operand.vmem [shape: f32[16,128], index: 1, kind: input, shape index: {}]   ;;  %s834_s2 = inlined_call_operand.vmem [shape: f32[1,128], index: 2, kind: input, shape index: {}]   ;;  %s835_s3 = inlined_call_operand.vmem [shape: f32[128,8], index: 3, kind: input, shape index: {}]   ;;  %s836_s4 = inlined_call_operand.vmem [shape: f32[1,8], index: 4, kind: input, shape index: {}]   ;;  %s837_s5 = inlined_call_operand.vmem [shape: f32[8,64], index: 5, kind: input, shape index: {}]   ;;  %s838_s6 = inlined_call_operand.vmem [shape: f32[1,64], index: 6, kind: input, shape index: {}]   ;;  %s839_s7 = inlined_call_operand.vmem [shape: f32[64,8], index: 7, kind: input, shape index: {}]   ;;  %s840_s8 = inlined_call_operand.vmem [shape: f32[1,8], index: 8, kind: input, shape index: {}]   ;;  %s841_s9 = inlined_call_operand.vmem [shape: f32[8,4], index: 9, kind: input, shape index: {}]   ;;  %s842_s10 = inlined_call_operand.vmem [shape: f32[1,4], index: 10, kind: input, shape index: {}]   ;;  %s843_s11 = inlined_call_operand.hbm [shape: f32[2,4], index: 11, kind: output, shape index: {}]  }
   0x1   :  { %v41_v0 = vld [vmem:[%s833_s1 + $0x8] sm:$0xff]  ;;  %528 = vmatprep.subr.mxu0 %v624_v1  ;;  %v40_v2 = vld [vmem:[%s833_s1] sm:$0xff]  ;;  %532 = vmatprep.mubr.msk.f32.mxu0 %vm625_vm0, %v624_v1  ;;  %v139_v3 = vld [vmem:[%s835_s3 + $0x78] sm:$0xff] }
   0x2   :  { %529 = vmatpush3.msra.mxu0 %v41_v0  ;;  %v39_v4 = vld [vmem:[%s832_s0] sm:$0x3]  ;;  %535 = vmatprep.subr.mxu1 %v624_v1  ;;  %v138_v5 = vld [vmem:[%s835_s3 + $0x70] sm:$0xff]  ;;  %v137_v6 = vld [vmem:[%s835_s3 + $0x68] sm:$0xff] }
   0x3   :  { %530 = vmatprep.subr.mxu0 %v624_v1  ;;  %536 = vmatpush3.msra.mxu1 %v139_v3 }
   0x4   :  { %531 = vmatpush3.msra.mxu0 %v40_v2  ;;  %537 = vmatprep.subr.mxu1 %v624_v1 }
   0x5   :  { %533 = vmatmul.mubr.msk.f32.vlgmr.msra.gmra.mxu0 %vm49_vm1, %v39_v4  ;;  %538 = vmatpush3.msra.mxu1 %v138_v5 }
   0x6   :  { %16 = vsyncpa [#allocation3], 0  ;;  %539 = vmatprep.subr.mxu1 %v624_v1  ;;  %v136_v7 = vld [vmem:[%s835_s3 + $0x60] sm:$0xff]  ;;  %567 = vmatprep.mubr.msk.f32.mxu1 %vm625_vm0, %v624_v1  ;;  %v135_v8 = vld [vmem:[%s835_s3 + $0x58] sm:$0xff]  ;;  %vm225_vm2 = vcmask 64512   ;;  %vm315_vm3 = vcmask 523264  }
   0x7   :  { %540 = vmatpush3.msra.mxu1 %v137_v6  ;;  %570 = vmatprep.subr.mxu0 %v624_v1  ;;  %v134_v9 = vld [vmem:[%s835_s3 + $0x50] sm:$0xff]  ;;  %v133_v10 = vld [vmem:[%s835_s3 + $0x48] sm:$0xff]  ;;  %v132_v11 = vld [vmem:[%s835_s3 + $0x40] sm:$0xff]  ;;  %s626_s16 = smov [#allocation2]   ;;  %vm470_vm4 = vcmask 25600  }
   0x8   :  { %541 = vmatprep.subr.mxu1 %v624_v1  ;;  %572 = vmatprep.mubr.msk.f32.mxu0 %vm625_vm0, %v624_v1  ;;  %v131_v12 = vld [vmem:[%s835_s3 + $0x38] sm:$0xff]  ;;  %v130_v13 = vld [vmem:[%s835_s3 + $0x30] sm:$0xff]  ;;  %v129_v14 = vld [vmem:[%s835_s3 + $0x28] sm:$0xff] }
   0x9   :  { %542 = vmatpush3.msra.mxu1 %v136_v7  ;;  %v128_v15 = vld [vmem:[%s835_s3 + $0x20] sm:$0xff]  ;;  %v127_v16 = vld [vmem:[%s835_s3 + $0x18] sm:$0xff]  ;;  %v126_v17 = vld [vmem:[%s835_s3 + $0x10] sm:$0xff] }
   0xa   :  { %543 = vmatprep.subr.mxu1 %v624_v1  ;;  %v125_v18 = vld [vmem:[%s835_s3 + $0x8] sm:$0xff]  ;;  %v124_v19 = vld [vmem:[%s835_s3] sm:$0xff]  ;;  %v307_v29 = vld [vmem:[%s839_s7 + $0x38] sm:$0xff] }
   0xb   :  { %544 = vmatpush3.msra.mxu1 %v135_v8  ;;  %v217_v20 = vld [vmem:[%s837_s5] sm:$0xff]  ;;  %v306_v31 = vld [vmem:[%s839_s7 + $0x30] sm:$0xff]  ;;  %v305_v32 = vld [vmem:[%s839_s7 + $0x28] sm:$0xff] }
   0xc   :  { %545 = vmatprep.subr.mxu1 %v624_v1  ;;  %571 = vmatpush3.msra.mxu0 %v217_v20  ;;  %v486_v21 = vld [vmem:[%s834_s2] ss:$0 sm:$0xff]  ;;  %v303_v34 = vld [vmem:[%s839_s7 + $0x18] sm:$0xff]  ;;  %v302_v35 = vld [vmem:[%s839_s7 + $0x10] sm:$0xff] }
   0xd   :  { %546 = vmatpush3.msra.mxu1 %v134_v9  ;;  %575 = vmatprep.subr.mxu0 %v624_v1  ;;  %v488_v26 = vld [vmem:[%s836_s4] ss:$0 sm:$0xff]  ;;  %v301_v36 = vld [vmem:[%s839_s7 + $0x8] sm:$0xff] }
   0xe   :  { %547 = vmatprep.subr.mxu1 %v624_v1  ;;  %v304_v33 = vld [vmem:[%s839_s7 + $0x20] sm:$0xff] }
   0xf   :  { %548 = vmatpush3.msra.mxu1 %v133_v10  ;;  %v300_v37 = vld [vmem:[%s839_s7] sm:$0xff] }
  0x10   :  { %549 = vmatprep.subr.mxu1 %v624_v1  ;;  %v489_v38 = vld [vmem:[%s838_s6] ss:$0 sm:$0xff] }
  0x11   :  { %550 = vmatpush3.msra.mxu1 %v132_v11  ;;  %v389_v43 = vld [vmem:[%s841_s9] sm:$0xff]  ;;  %s478_s9 = sshll.u32 %s626_s16, 4  ;;  %s479_s9 = int_to_ptr.vmem [resolvable:$true] %s478_s9 }
  0x12   :  { %551 = vmatprep.subr.mxu1 %v624_v1  ;;  %v491_v44 = vld [vmem:[%s840_s8] ss:$0 sm:$0xff]  ;;  %s602_s17 = scalar_lea.vmem %s479_s9, 32  ;;  %p607_p1 = scmp.lt.s32.totalorder %s479_s9, %s479_s9 }
  0x13   :  { %552 = vmatpush3.msra.mxu1 %v131_v12  ;;  %v493_v48 = vld [vmem:[%s842_s10] ss:$0 sm:$0xff]  ;;  %p603_p0 = scmp.ne.s32.totalorder %s479_s9, %s602_s17  ;;  %p608_p2 = scmp.lt.s32.totalorder %s602_s17, %s602_s17 }
  0x14   :  { %553 = vmatprep.subr.mxu1 %v624_v1 }
  0x15   :  { %554 = vmatpush3.msra.mxu1 %v130_v13  ;;  %p609_p3 = por %p608_p2, %p607_p1 }
  0x16   :  { %555 = vmatprep.subr.mxu1 %v624_v1 }
  0x17   :  { %556 = vmatpush3.msra.mxu1 %v129_v14  ;;  %p610_p4 = pnand %p609_p3, %p603_p0 }
  0x18   :  { %557 = vmatprep.subr.mxu1 %v624_v1 }
  0x19   :  { %558 = vmatpush3.msra.mxu1 %v128_v15 }
  0x1a   :  { %559 = vmatprep.subr.mxu1 %v624_v1 }
  0x1b   :  { %560 = vmatpush3.msra.mxu1 %v127_v16 }
  0x1c   :  { %561 = vmatprep.subr.mxu1 %v624_v1 }
  0x1d   :  { %562 = vmatpush3.msra.mxu1 %v126_v17 }
  0x1e   :  { %563 = vmatprep.subr.mxu1 %v624_v1 }
  0x1f   :  { %564 = vmatpush3.msra.mxu1 %v125_v18 }
  0x20   :  { %565 = vmatprep.subr.mxu1 %v624_v1 }
  0x21   :  { %566 = vmatpush3.msra.mxu1 %v124_v19 }
  0xc5   :  { %v119_v22 = vpop.f32.mrf.mxu0 }
  0xc6   :  { %v120_v23 = vadd.f32 %v486_v21, %v119_v22 }
  0xc7   :  { %v534_v24 = vpop.f32.mrf.mxu0 }
  0xc8   :  { %v123_v25 = vmul.f32 %v120_v23, %v120_v23 }
  0xca   :  { %568 = vmatmul.mubr.f32.vlgmr.msra.gmra.mxu1 %v123_v25 }
 0x18a   :  { %v213_v27 = vpop.f32.mrf.mxu1 }
 0x18b   :  { %v214_v28 = vadd.f32 %v488_v26, %v213_v27 }
 0x18c   :  { %v569_v30 = vpop.f32.mrf.mxu1 }
 0x18d   :  { %573 = vmatmul.mubr.msk.f32.vlgmr.msra.gmra.mxu0 %vm225_vm2, %v214_v28 }
 0x18e   :  { %576 = vmatpush3.msra.mxu0 %v307_v29  ;;  %591 = vmatprep.mubr.msk.f32.mxu0 %vm625_vm0, %v624_v1 }
 0x18f   :  { %577 = vmatprep.subr.mxu0 %v624_v1 }
 0x190   :  { %578 = vmatpush3.msra.mxu0 %v306_v31 }
 0x191   :  { %579 = vmatprep.subr.mxu0 %v624_v1 }
 0x192   :  { %580 = vmatpush3.msra.mxu0 %v305_v32 }
 0x193   :  { %581 = vmatprep.subr.mxu0 %v624_v1 }
 0x194   :  { %582 = vmatpush3.msra.mxu0 %v304_v33 }
 0x195   :  { %583 = vmatprep.subr.mxu0 %v624_v1 }
 0x196   :  { %584 = vmatpush3.msra.mxu0 %v303_v34 }
 0x197   :  { %585 = vmatprep.subr.mxu0 %v624_v1 }
 0x198   :  { %586 = vmatpush3.msra.mxu0 %v302_v35 }
 0x199   :  { %587 = vmatprep.subr.mxu0 %v624_v1 }
 0x19a   :  { %588 = vmatpush3.msra.mxu0 %v301_v36 }
 0x19b   :  { %589 = vmatprep.subr.mxu0 %v624_v1 }
 0x19c   :  { %590 = vmatpush3.msra.mxu0 %v300_v37 }
 0x19d   :  { %594 = vmatprep.subr.mxu0 %v624_v1 }
 0x24d   :  { %v295_v39 = vpop.f32.mrf.mxu0 }
 0x24e   :  { %v296_v40 = vadd.f32 %v489_v38, %v295_v39 }
 0x24f   :  { %v574_v41 = vpop.f32.mrf.mxu0 }
 0x250   :  { %v299_v42 = vmul.f32 %v296_v40, %v296_v40 }
 0x252   :  { %592 = vmatmul.mubr.msk.f32.vlgmr.msra.gmra.mxu0 %vm315_vm3, %v299_v42 }
 0x253   :  { %595 = vmatpush3.msra.mxu0 %v389_v43  ;;  %596 = vmatprep.mubr.msk.f32.mxu0 %vm625_vm0, %v624_v1 }
 0x312   :  { %v385_v45 = vpop.f32.mrf.mxu0 }
 0x313   :  { %v386_v46 = vadd.f32 %v491_v44, %v385_v45 }
 0x314   :  { %v593_v47 = vpop.f32.mrf.mxu0 }
 0x315   :  { %597 = vmatmul.mubr.msk.f32.vlgmr.msra.gmra.mxu0 %vm225_vm2, %v386_v46 }
 0x3d5   :  { %v466_v49 = vpop.f32.mrf.mxu0 }
 0x3d6   :  { %v467_v50 = vadd.f32 %v493_v48, %v466_v49 }
 0x3d7   :  { %v598_v51 = vpop.f32.mrf.mxu0 }
 0x3d8   :  { %471 = vst.msk [vmem:[#allocation2] sm:$0x3] %vm470_vm4, %v467_v50 }
 0x3d9   :  { %613 = shalt.err (!%p610_p4)
}
 0x3da   :  { %481 = dma.vmem_to_hbm [thread:$0]  %s479_s9, 32, %s843_s11, [#allocation3]  }
 0x3db   :  { %622 = dma.done.wait [#allocation3], 32  }
 0x3dc   :  { %623 = vsyncadd [#allocation3], 4294967264 }
 0x3dd   :  { %485 = vsyncpa [#allocation3], 1 }

</bundles_post_ra>
